<compile_context>
chip_gen: v7x
topology: tpu7x:2x2x1
jax: 0.10.0
libtpu: 0.0.40
codegen_flags: <defaults>
</compile_context>

<pallas_src>
import functools

import jax
import jax.numpy as jnp
from jax import lax
from jax.experimental import pallas as pl
from jax.experimental.pallas import tpu as pltpu


def _mh_cross_attn_kernel(x_ref, ctx_ref, wq_ref, wk_ref, wv_ref, wu_ref, bu_ref,
                          o_ref, attn_scratch, *, heads, head_dim, matmul_dtype):
    """One (batch, query-tile) step: full multi-head cross-attention."""
    x = x_ref[0].astype(matmul_dtype)        # (Tq, K)
    ctx = ctx_ref[0].astype(matmul_dtype)    # (Tc, K)

    wq = wq_ref[...]                         # (K, K) -- scale pre-folded, pre-cast
    wk = wk_ref[...]                         # (K, K)
    wv = wv_ref[...]                         # (K, K)
    wu = wu_ref[...]                         # (K, K)

    # Full-width projections: lane-dense (contraction dim = K) MXU matmuls.
    q = jnp.dot(x, wq, preferred_element_type=jnp.float32)    # (Tq, K) f32
    k = jnp.dot(ctx, wk, preferred_element_type=jnp.float32)  # (Tc, K) f32
    v = jnp.dot(ctx, wv, preferred_element_type=jnp.float32)  # (Tc, K) f32

    # Per-head attention; static unroll (heads is small). Scores contract on the
    # last dim of both operands -- no explicit transpose of k.
    for h in range(heads):
        sl = slice(h * head_dim, (h + 1) * head_dim)
        qh = q[:, sl].astype(matmul_dtype)                     # (Tq, S)
        kh = k[:, sl].astype(matmul_dtype)                     # (Tc, S)
        vh = v[:, sl].astype(matmul_dtype)                     # (Tc, S)

        dots = lax.dot_general(qh, kh, (((1,), (1,)), ((), ())),
                               preferred_element_type=jnp.float32)   # (Tq, Tc)
        dots = dots - jnp.max(dots, axis=1, keepdims=True)
        p = jnp.exp(dots)
        p = p * pl.reciprocal(jnp.sum(p, axis=1, keepdims=True), approx=True)

        attn_scratch[:, sl] = jnp.dot(p.astype(matmul_dtype), vh,
                                      preferred_element_type=jnp.float32)

    # Single full-K unify projection + bias (bias stays f32, added once).
    attn = attn_scratch[...].astype(matmul_dtype)              # (Tq, K)
    out = jnp.dot(attn, wu, preferred_element_type=jnp.float32) + bu_ref[...]
    o_ref[0] = out.astype(o_ref.dtype)


def _choose_q_tile(t, max_tile=512):
    """Largest multiple-of-8 divisor of t that is <= max_tile, else a padded tile."""
    if t <= max_tile:
        return t
    for cand in range(max_tile - max_tile % 8, 7, -8):
        if t % cand == 0:
            return cand
    return max_tile  # last block is padded; padded rows are never written back


def mh_cross_attention(x, context, wq, wk, wv, wu, bu, *, heads,
                       matmul_dtype=jnp.bfloat16, q_tile=None):
    """Pallas implementation of MHCrossAttention.forward.

    Args:
      x:       (B, T, K)  float32
      context: (B, Tc, K) float32
      wq/wk/wv/wu: PyTorch-style Linear weights, shape (K, K) (out_features, in_features)
      bu: unifyHeads bias, shape (K,)
      heads: number of attention heads (K % heads == 0)
      matmul_dtype: MXU operand dtype (bf16 default; accumulation is always f32)
    """
    b, t, k = x.shape
    bc, tc, kc = context.shape
    assert bc == b and kc == k and k % heads == 0
    s = k // heads
    scale = 1.0 / (float(k) ** 0.25)

    # Host-side one-time weight prep: transpose to (in, out) so the kernel
    # right-multiplies, fold the e**-0.25 q/k scaling into Wq and Wk, and
    # pre-cast to the MXU operand dtype (smaller resident footprint, no
    # per-step VPU casts or scale multiplies).
    mq = (jnp.transpose(wq) * scale).astype(matmul_dtype)   # (K, K)
    mk = (jnp.transpose(wk) * scale).astype(matmul_dtype)   # (K, K)
    mv = jnp.transpose(wv).astype(matmul_dtype)             # (K, K)
    mu = jnp.transpose(wu).astype(matmul_dtype)             # (K, K)
    bu2 = bu.reshape(1, k).astype(jnp.float32)              # bias stays f32

    tq = q_tile if q_tile is not None else _choose_q_tile(t)
    nt = pl.cdiv(t, tq)

    kernel = functools.partial(_mh_cross_attn_kernel, heads=heads, head_dim=s,
                               matmul_dtype=matmul_dtype)

    return pl.pallas_call(
        kernel,
        out_shape=jax.ShapeDtypeStruct((b, t, k), x.dtype),
        grid=(b, nt),
        in_specs=[
            pl.BlockSpec((1, tq, k), lambda i, j: (i, j, 0)),   # x query tile
            pl.BlockSpec((1, tc, k), lambda i, j: (i, 0, 0)),   # context (per batch)
            pl.BlockSpec((k, k), lambda i, j: (0, 0)),          # Wq (resident)
            pl.BlockSpec((k, k), lambda i, j: (0, 0)),          # Wk (resident)
            pl.BlockSpec((k, k), lambda i, j: (0, 0)),          # Wv (resident)
            pl.BlockSpec((k, k), lambda i, j: (0, 0)),          # Wu (resident)
            pl.BlockSpec((1, k), lambda i, j: (0, 0)),          # unify bias
        ],
        out_specs=pl.BlockSpec((1, tq, k), lambda i, j: (i, j, 0)),
        scratch_shapes=[pltpu.VMEM((tq, k), jnp.float32)],      # concat'd head outputs
        compiler_params=pltpu.CompilerParams(
            dimension_semantics=("parallel", "parallel")),
    )(x, context, mq, mk, mv, mu, bu2)


def _reference(x, context, wq, wk, wv, wu, bu, *, heads):
    """Pure-JAX port of the PyTorch forward, for verification."""
    b, t, e = x.shape
    _, tc, _ = context.shape
    h = heads
    s = e // h
    q = x @ wq.T
    k = context @ wk.T
    v = context @ wv.T
    q = q.reshape(b, t, h, s).transpose(0, 2, 1, 3).reshape(b * h, t, s)
    k = k.reshape(b, tc, h, s).transpose(0, 2, 1, 3).reshape(b * h, tc, s)
    v = v.reshape(b, tc, h, s).transpose(0, 2, 1, 3).reshape(b * h, tc, s)
    q = q / e ** 0.25
    k = k / e ** 0.25
    dot = jnp.einsum('bts,bus->btu', q, k)
    dot = jax.nn.softmax(dot, axis=2)
    out = jnp.einsum('btu,bus->bts', dot, v).reshape(b, h, t, s)
    out = out.transpose(0, 2, 1, 3).reshape(b, t, h * s)
    return out @ wu.T + bu


if __name__ == "__main__":
    B, T, TC, K, HEADS = 2, 8, 16, 32, 4

    key = jax.random.PRNGKey(0)
    kx, kc, k1, k2, k3, k4, k5 = jax.random.split(key, 7)

    x = jax.random.normal(kx, (B, T, K), dtype=jnp.float32)
    context = jax.random.normal(kc, (B, TC, K), dtype=jnp.float32)

    # Deterministic parameter init (torch.nn.Linear-style uniform bound 1/sqrt(K)).
    bound = 1.0 / (K ** 0.5)
    wq = jax.random.uniform(k1, (K, K), jnp.float32, -bound, bound)
    wk = jax.random.uniform(k2, (K, K), jnp.float32, -bound, bound)
    wv = jax.random.uniform(k3, (K, K), jnp.float32, -bound, bound)
    wu = jax.random.uniform(k4, (K, K), jnp.float32, -bound, bound)
    bu = jax.random.uniform(k5, (K,), jnp.float32, -bound, bound)

    ref = _reference(x, context, wq, wk, wv, wu, bu, heads=HEADS)

    # Default perf path: bf16 MXU operands, f32 accumulation.
    out_bf16 = mh_cross_attention(x, context, wq, wk, wv, wu, bu, heads=HEADS)
    out_bf16 = jax.block_until_ready(out_bf16)
    assert out_bf16.shape == (B, T, K)
    assert jnp.allclose(out_bf16, ref, atol=3e-2, rtol=3e-2), "bf16 path mismatch"

    # Full-f32 operand path for a tighter structural check.
    out_f32 = mh_cross_attention(x, context, wq, wk, wv, wu, bu, heads=HEADS,
                                 matmul_dtype=jnp.float32)
    out_f32 = jax.block_until_ready(out_f32)
    assert jnp.allclose(out_f32, ref, atol=1e-2, rtol=1e-2), "f32 path mismatch"

    print("KERNEL_OK")
</pallas_src>

<mosaic_0001>
module attributes {stable_mosaic.version = 11 : i64} {
  func.func @_mh_cross_attn_kernel(%arg0: i32, %arg1: i32, %arg2: memref<1x8x32xf32, #tpu.memory_space<vmem>>, %arg3: memref<1x16x32xf32, #tpu.memory_space<vmem>>, %arg4: memref<32x32xbf16, #tpu.memory_space<vmem>>, %arg5: memref<32x32xbf16, #tpu.memory_space<vmem>>, %arg6: memref<32x32xbf16, #tpu.memory_space<vmem>>, %arg7: memref<32x32xbf16, #tpu.memory_space<vmem>>, %arg8: memref<1x32xf32, #tpu.memory_space<vmem>>, %arg9: memref<1x8x32xf32, #tpu.memory_space<vmem>>, %arg10: memref<8x32xf32, #tpu.memory_space<vmem>>) attributes {dimension_semantics = [#tpu.dimension_semantics<parallel>, #tpu.dimension_semantics<parallel>], iteration_bounds = array<i64: 2, 1>, scalar_prefetch = 0 : i64, scratch_operands = 1 : i64, tpu.core_type = #tpu.core_type<tc>, window_params = [{transform_indices = @transform_0, window_bounds = array<i64: 1, 8, 32>}, {transform_indices = @transform_1, window_bounds = array<i64: 1, 16, 32>}, {pipeline_mode = #tpu.pipeline_mode<synchronous>, transform_indices = @transform_2, window_bounds = array<i64: 32, 32>}, {pipeline_mode = #tpu.pipeline_mode<synchronous>, transform_indices = @transform_3, window_bounds = array<i64: 32, 32>}, {pipeline_mode = #tpu.pipeline_mode<synchronous>, transform_indices = @transform_4, window_bounds = array<i64: 32, 32>}, {pipeline_mode = #tpu.pipeline_mode<synchronous>, transform_indices = @transform_5, window_bounds = array<i64: 32, 32>}, {pipeline_mode = #tpu.pipeline_mode<synchronous>, transform_indices = @transform_6, window_bounds = array<i64: 1, 32>}, {transform_indices = @transform_7, window_bounds = array<i64: 1, 8, 32>}]} {
    %c0 = arith.constant 0 : index
    %c0_0 = arith.constant 0 : index
    %c0_1 = arith.constant 0 : index
    %0 = vector.load %arg2[%c0, %c0_0, %c0_1] : memref<1x8x32xf32, #tpu.memory_space<vmem>>, vector<1x8x32xf32>
    %1 = vector.shape_cast %0 : vector<1x8x32xf32> to vector<8x32xf32>
    %2 = arith.truncf %1 : vector<8x32xf32> to vector<8x32xbf16>
    %c0_2 = arith.constant 0 : index
    %c0_3 = arith.constant 0 : index
    %c0_4 = arith.constant 0 : index
    %3 = vector.load %arg3[%c0_2, %c0_3, %c0_4] : memref<1x16x32xf32, #tpu.memory_space<vmem>>, vector<1x16x32xf32>
    %4 = vector.shape_cast %3 : vector<1x16x32xf32> to vector<16x32xf32>
    %5 = arith.truncf %4 : vector<16x32xf32> to vector<16x32xbf16>
    %c0_5 = arith.constant 0 : index
    %c0_6 = arith.constant 0 : index
    %6 = vector.load %arg4[%c0_5, %c0_6] : memref<32x32xbf16, #tpu.memory_space<vmem>>, vector<32x32xbf16>
    %c0_7 = arith.constant 0 : index
    %c0_8 = arith.constant 0 : index
    %7 = vector.load %arg5[%c0_7, %c0_8] : memref<32x32xbf16, #tpu.memory_space<vmem>>, vector<32x32xbf16>
    %c0_9 = arith.constant 0 : index
    %c0_10 = arith.constant 0 : index
    %8 = vector.load %arg6[%c0_9, %c0_10] : memref<32x32xbf16, #tpu.memory_space<vmem>>, vector<32x32xbf16>
    %c0_11 = arith.constant 0 : index
    %c0_12 = arith.constant 0 : index
    %9 = vector.load %arg7[%c0_11, %c0_12] : memref<32x32xbf16, #tpu.memory_space<vmem>>, vector<32x32xbf16>
    %cst = arith.constant dense<0.000000e+00> : vector<8x32xf32>
    %10 = tpu.matmul %2, %6, %cst {dimension_numbers = #tpu.dot_dimension_numbers<[1], [0], [0], [1], [0, 0, 1, 1], [], []>} : vector<8x32xbf16>, vector<32x32xbf16>, vector<8x32xf32> -> vector<8x32xf32>
    %cst_13 = arith.constant dense<0.000000e+00> : vector<16x32xf32>
    %11 = tpu.matmul %5, %7, %cst_13 {dimension_numbers = #tpu.dot_dimension_numbers<[1], [0], [0], [1], [0, 0, 1, 1], [], []>} : vector<16x32xbf16>, vector<32x32xbf16>, vector<16x32xf32> -> vector<16x32xf32>
    %cst_14 = arith.constant dense<0.000000e+00> : vector<16x32xf32>
    %12 = tpu.matmul %5, %8, %cst_14 {dimension_numbers = #tpu.dot_dimension_numbers<[1], [0], [0], [1], [0, 0, 1, 1], [], []>} : vector<16x32xbf16>, vector<32x32xbf16>, vector<16x32xf32> -> vector<16x32xf32>
    %13 = vector.extract_strided_slice %10 {offsets = [0, 0], sizes = [8, 8], strides = [1, 1]} : vector<8x32xf32> to vector<8x8xf32>
    %14 = arith.truncf %13 : vector<8x8xf32> to vector<8x8xbf16>
    %15 = vector.extract_strided_slice %11 {offsets = [0, 0], sizes = [16, 8], strides = [1, 1]} : vector<16x32xf32> to vector<16x8xf32>
    %16 = arith.truncf %15 : vector<16x8xf32> to vector<16x8xbf16>
    %17 = vector.extract_strided_slice %12 {offsets = [0, 0], sizes = [16, 8], strides = [1, 1]} : vector<16x32xf32> to vector<16x8xf32>
    %18 = arith.truncf %17 : vector<16x8xf32> to vector<16x8xbf16>
    %cst_15 = arith.constant dense<0.000000e+00> : vector<8x16xf32>
    %19 = tpu.matmul %14, %16, %cst_15 {dimension_numbers = #tpu.dot_dimension_numbers<[1], [1], [0], [0], [0, 0, 1, 0], [], []>} : vector<8x8xbf16>, vector<16x8xbf16>, vector<8x16xf32> -> vector<8x16xf32>
    %cst_16 = arith.constant dense<0xFF800000> : vector<8xf32>
    %20 = vector.multi_reduction <maximumf>, %19, %cst_16 [1] : vector<8x16xf32> to vector<8xf32>
    %21 = vector.shape_cast %20 : vector<8xf32> to vector<8x1xf32>
    %22 = vector.broadcast %21 : vector<8x1xf32> to vector<8x16xf32>
    %23 = arith.subf %19, %22 : vector<8x16xf32>
    %24 = math.exp %23 : vector<8x16xf32>
    %cst_17 = arith.constant dense<0.000000e+00> : vector<8xf32>
    %25 = vector.multi_reduction <add>, %24, %cst_17 [1] : vector<8x16xf32> to vector<8xf32>
    %26 = vector.shape_cast %25 : vector<8xf32> to vector<8x1xf32>
    %27 = tpu.reciprocal %26 {approx = true} : vector<8x1xf32> -> vector<8x1xf32>
    %28 = vector.broadcast %27 : vector<8x1xf32> to vector<8x16xf32>
    %29 = arith.mulf %24, %28 : vector<8x16xf32>
    %30 = arith.truncf %29 : vector<8x16xf32> to vector<8x16xbf16>
    %cst_18 = arith.constant dense<0.000000e+00> : vector<8x8xf32>
    %31 = tpu.matmul %30, %18, %cst_18 {dimension_numbers = #tpu.dot_dimension_numbers<[1], [0], [0], [1], [0, 0, 1, 1], [], []>} : vector<8x16xbf16>, vector<16x8xbf16>, vector<8x8xf32> -> vector<8x8xf32>
    %c0_19 = arith.constant 0 : index
    %c0_20 = arith.constant 0 : index
    %32 = vector.load %arg10[%c0_19, %c0_20] : memref<8x32xf32, #tpu.memory_space<vmem>>, vector<8x8xf32>
    tpu.vector_store %arg10[%c0_19, %c0_20], %31 {strides = array<i32>} : memref<8x32xf32, #tpu.memory_space<vmem>>, vector<8x8xf32>,
    %33 = vector.extract_strided_slice %10 {offsets = [0, 8], sizes = [8, 8], strides = [1, 1]} : vector<8x32xf32> to vector<8x8xf32>
    %34 = arith.truncf %33 : vector<8x8xf32> to vector<8x8xbf16>
    %35 = vector.extract_strided_slice %11 {offsets = [0, 8], sizes = [16, 8], strides = [1, 1]} : vector<16x32xf32> to vector<16x8xf32>
    %36 = arith.truncf %35 : vector<16x8xf32> to vector<16x8xbf16>
    %37 = vector.extract_strided_slice %12 {offsets = [0, 8], sizes = [16, 8], strides = [1, 1]} : vector<16x32xf32> to vector<16x8xf32>
    %38 = arith.truncf %37 : vector<16x8xf32> to vector<16x8xbf16>
    %cst_21 = arith.constant dense<0.000000e+00> : vector<8x16xf32>
    %39 = tpu.matmul %34, %36, %cst_21 {dimension_numbers = #tpu.dot_dimension_numbers<[1], [1], [0], [0], [0, 0, 1, 0], [], []>} : vector<8x8xbf16>, vector<16x8xbf16>, vector<8x16xf32> -> vector<8x16xf32>
    %cst_22 = arith.constant dense<0xFF800000> : vector<8xf32>
    %40 = vector.multi_reduction <maximumf>, %39, %cst_22 [1] : vector<8x16xf32> to vector<8xf32>
    %41 = vector.shape_cast %40 : vector<8xf32> to vector<8x1xf32>
    %42 = vector.broadcast %41 : vector<8x1xf32> to vector<8x16xf32>
    %43 = arith.subf %39, %42 : vector<8x16xf32>
    %44 = math.exp %43 : vector<8x16xf32>
    %cst_23 = arith.constant dense<0.000000e+00> : vector<8xf32>
    %45 = vector.multi_reduction <add>, %44, %cst_23 [1] : vector<8x16xf32> to vector<8xf32>
    %46 = vector.shape_cast %45 : vector<8xf32> to vector<8x1xf32>
    %47 = tpu.reciprocal %46 {approx = true} : vector<8x1xf32> -> vector<8x1xf32>
    %48 = vector.broadcast %47 : vector<8x1xf32> to vector<8x16xf32>
    %49 = arith.mulf %44, %48 : vector<8x16xf32>
    %50 = arith.truncf %49 : vector<8x16xf32> to vector<8x16xbf16>
    %cst_24 = arith.constant dense<0.000000e+00> : vector<8x8xf32>
    %51 = tpu.matmul %50, %38, %cst_24 {dimension_numbers = #tpu.dot_dimension_numbers<[1], [0], [0], [1], [0, 0, 1, 1], [], []>} : vector<8x16xbf16>, vector<16x8xbf16>, vector<8x8xf32> -> vector<8x8xf32>
    %c0_25 = arith.constant 0 : index
    %c8 = arith.constant 8 : index
    %52 = vector.load %arg10[%c0_25, %c8] : memref<8x32xf32, #tpu.memory_space<vmem>>, vector<8x8xf32>
    tpu.vector_store %arg10[%c0_25, %c8], %51 {strides = array<i32>} : memref<8x32xf32, #tpu.memory_space<vmem>>, vector<8x8xf32>,
    %53 = vector.extract_strided_slice %10 {offsets = [0, 16], sizes = [8, 8], strides = [1, 1]} : vector<8x32xf32> to vector<8x8xf32>
    %54 = arith.truncf %53 : vector<8x8xf32> to vector<8x8xbf16>
    %55 = vector.extract_strided_slice %11 {offsets = [0, 16], sizes = [16, 8], strides = [1, 1]} : vector<16x32xf32> to vector<16x8xf32>
    %56 = arith.truncf %55 : vector<16x8xf32> to vector<16x8xbf16>
    %57 = vector.extract_strided_slice %12 {offsets = [0, 16], sizes = [16, 8], strides = [1, 1]} : vector<16x32xf32> to vector<16x8xf32>
    %58 = arith.truncf %57 : vector<16x8xf32> to vector<16x8xbf16>
    %cst_26 = arith.constant dense<0.000000e+00> : vector<8x16xf32>
    %59 = tpu.matmul %54, %56, %cst_26 {dimension_numbers = #tpu.dot_dimension_numbers<[1], [1], [0], [0], [0, 0, 1, 0], [], []>} : vector<8x8xbf16>, vector<16x8xbf16>, vector<8x16xf32> -> vector<8x16xf32>
    %cst_27 = arith.constant dense<0xFF800000> : vector<8xf32>
    %60 = vector.multi_reduction <maximumf>, %59, %cst_27 [1] : vector<8x16xf32> to vector<8xf32>
    %61 = vector.shape_cast %60 : vector<8xf32> to vector<8x1xf32>
    %62 = vector.broadcast %61 : vector<8x1xf32> to vector<8x16xf32>
    %63 = arith.subf %59, %62 : vector<8x16xf32>
    %64 = math.exp %63 : vector<8x16xf32>
    %cst_28 = arith.constant dense<0.000000e+00> : vector<8xf32>
    %65 = vector.multi_reduction <add>, %64, %cst_28 [1] : vector<8x16xf32> to vector<8xf32>
    %66 = vector.shape_cast %65 : vector<8xf32> to vector<8x1xf32>
    %67 = tpu.reciprocal %66 {approx = true} : vector<8x1xf32> -> vector<8x1xf32>
    %68 = vector.broadcast %67 : vector<8x1xf32> to vector<8x16xf32>
    %69 = arith.mulf %64, %68 : vector<8x16xf32>
    %70 = arith.truncf %69 : vector<8x16xf32> to vector<8x16xbf16>
    %cst_29 = arith.constant dense<0.000000e+00> : vector<8x8xf32>
    %71 = tpu.matmul %70, %58, %cst_29 {dimension_numbers = #tpu.dot_dimension_numbers<[1], [0], [0], [1], [0, 0, 1, 1], [], []>} : vector<8x16xbf16>, vector<16x8xbf16>, vector<8x8xf32> -> vector<8x8xf32>
    %c0_30 = arith.constant 0 : index
    %c16 = arith.constant 16 : index
    %72 = vector.load %arg10[%c0_30, %c16] : memref<8x32xf32, #tpu.memory_space<vmem>>, vector<8x8xf32>
    tpu.vector_store %arg10[%c0_30, %c16], %71 {strides = array<i32>} : memref<8x32xf32, #tpu.memory_space<vmem>>, vector<8x8xf32>,
    %73 = vector.extract_strided_slice %10 {offsets = [0, 24], sizes = [8, 8], strides = [1, 1]} : vector<8x32xf32> to vector<8x8xf32>
    %74 = arith.truncf %73 : vector<8x8xf32> to vector<8x8xbf16>
    %75 = vector.extract_strided_slice %11 {offsets = [0, 24], sizes = [16, 8], strides = [1, 1]} : vector<16x32xf32> to vector<16x8xf32>
    %76 = arith.truncf %75 : vector<16x8xf32> to vector<16x8xbf16>
    %77 = vector.extract_strided_slice %12 {offsets = [0, 24], sizes = [16, 8], strides = [1, 1]} : vector<16x32xf32> to vector<16x8xf32>
    %78 = arith.truncf %77 : vector<16x8xf32> to vector<16x8xbf16>
    %cst_31 = arith.constant dense<0.000000e+00> : vector<8x16xf32>
    %79 = tpu.matmul %74, %76, %cst_31 {dimension_numbers = #tpu.dot_dimension_numbers<[1], [1], [0], [0], [0, 0, 1, 0], [], []>} : vector<8x8xbf16>, vector<16x8xbf16>, vector<8x16xf32> -> vector<8x16xf32>
    %cst_32 = arith.constant dense<0xFF800000> : vector<8xf32>
    %80 = vector.multi_reduction <maximumf>, %79, %cst_32 [1] : vector<8x16xf32> to vector<8xf32>
    %81 = vector.shape_cast %80 : vector<8xf32> to vector<8x1xf32>
    %82 = vector.broadcast %81 : vector<8x1xf32> to vector<8x16xf32>
    %83 = arith.subf %79, %82 : vector<8x16xf32>
    %84 = math.exp %83 : vector<8x16xf32>
    %cst_33 = arith.constant dense<0.000000e+00> : vector<8xf32>
    %85 = vector.multi_reduction <add>, %84, %cst_33 [1] : vector<8x16xf32> to vector<8xf32>
    %86 = vector.shape_cast %85 : vector<8xf32> to vector<8x1xf32>
    %87 = tpu.reciprocal %86 {approx = true} : vector<8x1xf32> -> vector<8x1xf32>
    %88 = vector.broadcast %87 : vector<8x1xf32> to vector<8x16xf32>
    %89 = arith.mulf %84, %88 : vector<8x16xf32>
    %90 = arith.truncf %89 : vector<8x16xf32> to vector<8x16xbf16>
    %cst_34 = arith.constant dense<0.000000e+00> : vector<8x8xf32>
    %91 = tpu.matmul %90, %78, %cst_34 {dimension_numbers = #tpu.dot_dimension_numbers<[1], [0], [0], [1], [0, 0, 1, 1], [], []>} : vector<8x16xbf16>, vector<16x8xbf16>, vector<8x8xf32> -> vector<8x8xf32>
    %c0_35 = arith.constant 0 : index
    %c24 = arith.constant 24 : index
    %92 = vector.load %arg10[%c0_35, %c24] : memref<8x32xf32, #tpu.memory_space<vmem>>, vector<8x8xf32>
    tpu.vector_store %arg10[%c0_35, %c24], %91 {strides = array<i32>} : memref<8x32xf32, #tpu.memory_space<vmem>>, vector<8x8xf32>,
    %c0_36 = arith.constant 0 : index
    %c0_37 = arith.constant 0 : index
    %93 = vector.load %arg10[%c0_36, %c0_37] : memref<8x32xf32, #tpu.memory_space<vmem>>, vector<8x32xf32>
    %94 = arith.truncf %93 : vector<8x32xf32> to vector<8x32xbf16>
    %cst_38 = arith.constant dense<0.000000e+00> : vector<8x32xf32>
    %95 = tpu.matmul %94, %9, %cst_38 {dimension_numbers = #tpu.dot_dimension_numbers<[1], [0], [0], [1], [0, 0, 1, 1], [], []>} : vector<8x32xbf16>, vector<32x32xbf16>, vector<8x32xf32> -> vector<8x32xf32>
    %c0_39 = arith.constant 0 : index
    %c0_40 = arith.constant 0 : index
    %96 = vector.load %arg8[%c0_39, %c0_40] : memref<1x32xf32, #tpu.memory_space<vmem>>, vector<1x32xf32>
    %97 = vector.broadcast %96 : vector<1x32xf32> to vector<8x32xf32>
    %98 = arith.addf %95, %97 : vector<8x32xf32>
    %c0_41 = arith.constant 0 : index
    %c0_42 = arith.constant 0 : index
    %c0_43 = arith.constant 0 : index
    %99 = vector.load %arg9[%c0_41, %c0_42, %c0_43] : memref<1x8x32xf32, #tpu.memory_space<vmem>>, vector<1x8x32xf32>
    %100 = vector.shape_cast %99 : vector<1x8x32xf32> to vector<8x32xf32>
    %101 = vector.shape_cast %98 : vector<8x32xf32> to vector<1x8x32xf32>
    tpu.vector_store %arg9[%c0_41, %c0_42, %c0_43], %101 {strides = array<i32>} : memref<1x8x32xf32, #tpu.memory_space<vmem>>, vector<1x8x32xf32>,
    return
  }
  func.func @transform_0(%arg0: i32, %arg1: i32) -> (i32, i32, i32) {
    %c0_i32 = arith.constant 0 : i32
    %c0_i32_0 = arith.constant 0 : i32
    return %arg0, %arg1, %c0_i32 : i32, i32, i32
  }
  func.func @transform_1(%arg0: i32, %arg1: i32) -> (i32, i32, i32) {
    %c0_i32 = arith.constant 0 : i32
    %c0_i32_0 = arith.constant 0 : i32
    %c0_i32_1 = arith.constant 0 : i32
    return %arg0, %c0_i32, %c0_i32_0 : i32, i32, i32
  }
  func.func @transform_2(%arg0: i32, %arg1: i32) -> (i32, i32) {
    %c0_i32 = arith.constant 0 : i32
    %c0_i32_0 = arith.constant 0 : i32
    %c0_i32_1 = arith.constant 0 : i32
    return %c0_i32, %c0_i32_0 : i32, i32
  }
  func.func @transform_3(%arg0: i32, %arg1: i32) -> (i32, i32) {
    %c0_i32 = arith.constant 0 : i32
    %c0_i32_0 = arith.constant 0 : i32
    %c0_i32_1 = arith.constant 0 : i32
    return %c0_i32, %c0_i32_0 : i32, i32
  }
  func.func @transform_4(%arg0: i32, %arg1: i32) -> (i32, i32) {
    %c0_i32 = arith.constant 0 : i32
    %c0_i32_0 = arith.constant 0 : i32
    %c0_i32_1 = arith.constant 0 : i32
    return %c0_i32, %c0_i32_0 : i32, i32
  }
  func.func @transform_5(%arg0: i32, %arg1: i32) -> (i32, i32) {
    %c0_i32 = arith.constant 0 : i32
    %c0_i32_0 = arith.constant 0 : i32
    %c0_i32_1 = arith.constant 0 : i32
    return %c0_i32, %c0_i32_0 : i32, i32
  }
  func.func @transform_6(%arg0: i32, %arg1: i32) -> (i32, i32) {
    %c0_i32 = arith.constant 0 : i32
    %c0_i32_0 = arith.constant 0 : i32
    %c0_i32_1 = arith.constant 0 : i32
    return %c0_i32, %c0_i32_0 : i32, i32
  }
  func.func @transform_7(%arg0: i32, %arg1: i32) -> (i32, i32, i32) {
    %c0_i32 = arith.constant 0 : i32
    %c0_i32_0 = arith.constant 0 : i32
    return %arg0, %arg1, %c0_i32 : i32, i32, i32
  }
}

</mosaic_0001>

<bundles_post_ra>
// kernel: tpu_custom_call.1
= control target key start
LH: loop header
LB: loop body
LE: loop exit
PB: predicated region body
PF: predicated region fallthrough
CT: control target
= control target key end

     0   :  { %s2247_s0 = inlined_call_operand.hbm [shape: f32[2,8,32], index: 0, kind: input, shape index: {}]   ;;  %s2248_s1 = inlined_call_operand.hbm [shape: f32[2,16,32], index: 1, kind: input, shape index: {}]   ;;  %s2249_s2 = inlined_call_operand.hbm [shape: bf16[32,32], index: 2, kind: input, shape index: {}]   ;;  %s2250_s3 = inlined_call_operand.hbm [shape: bf16[32,32], index: 3, kind: input, shape index: {}]   ;;  %s2251_s4 = inlined_call_operand.hbm [shape: bf16[32,32], index: 4, kind: input, shape index: {}]   ;;  %s2252_s5 = inlined_call_operand.vmem [shape: bf16[32,32], index: 5, kind: input, shape index: {}]   ;;  %s2253_s6 = inlined_call_operand.vmem [shape: f32[1,32], index: 6, kind: input, shape index: {}]   ;;  %s2254_s7 = inlined_call_operand.hbm [shape: f32[2,8,32], index: 7, kind: output, shape index: {}]  }
   0x1   :  { %2261 = sst [smem:[#allocation20_spill]] %s2247_s0 }
   0x2   :  { %2262 = sst [smem:[#allocation21_spill]] %s2249_s2 }
   0x3   :  { %2263 = sst [smem:[#allocation22_spill]] %s2254_s7 }
   0x4   :  { %12 = vsyncpa [#allocation4], 0 }
   0x5   :  { %14 = vsyncpa [#allocation4 + $0x1], 0 }
   0x6   :  { %15 = vsyncpa [#allocation7], 0 }
   0x7   :  { %17 = vsyncpa [#allocation7 + $0x1], 0 }
   0x8   :  { %18 = vsyncpa [#allocation10], 0 }
   0x9   :  { %19 = vsyncpa [#allocation5], 0 }
   0xa   :  { %21 = vsyncpa [#allocation5 + $0x1], 0  ;;  %s1829_s24 = smov 0   ;;  %s1831_s25 = smov 0  }
   0xb   :  { %s1833_s26 = smov 0   ;;  %s1835_s27 = smov 0  }
   0xc   :  { %s1837_s28 = smov 0   ;;  %s1839_s29 = smov 0  }
   0xd LB: > { %2264 = sst [smem:[#allocation18_spill]] %s1749_s24  ;;  %s1860_s30 = sadd.s32 4294967295, %s1769_s29   ;;  %s1769_s29 = sphi %s1839_s29, %s27_s29   ;;  %s1765_s28 = sphi %s1837_s28, %s2292_s28   ;;  %s1761_s27 = sphi %s1835_s27, %s2291_s27   ;;  %s1757_s26 = sphi %s1833_s26, %s2290_s26   ;;  %s1753_s25 = sphi %s1831_s25, %s2289_s25   ;;  %s1749_s24 = sphi %s1829_s24, %s2288_s24  }
   0xe   : > { %s1245_s8 = sadd.s32 4294967294, %s1769_s29   ;;  %p61_p0 = scmp.ne.s32.totalorder %s1753_s25, %s1749_s24 }
   0xf   : > { %p2255_p1 = scmp.eq.s32.totalorder %s1860_s30, 0  ;;  %p224_p3 = scmp.eq.s32.totalorder %s1245_s8, 1 }
  0x10   : > { %p1246_p5 = scmp.ge.s32.totalorder %s1769_s29, 1  ;;  %p231_p7 = scmp.lt.s32.totalorder %s1769_s29, 3 }
  0x11   : > { %p1869_p4 = por %p2255_p1, %p61_p0  ;;  %p1874_p6 = por %p224_p3, %p61_p0 }
  0x12   : > { %p1879_p8 = pnand %p1246_p5, %p231_p7  ;;  %s1771_s12 = smov [#allocation8]  }
  0x13   : > { %s2265_s9 = scalar_select %p1869_p4, 1, 0 }
  0x14   : > { %s2266_s10 = scalar_select %p1874_p6, 1, 0 }
  0x15   : > { %s2268_s11 = scalar_select %p1879_p8, 1, 0 }
  0x16   : > { %2267 = sst [smem:[#allocation19_spill]] %s2266_s10  ;;  %s243_s13 = sshll.u32 %s1771_s12, 4  ;;  %s1883_s13 = int_to_ptr.vmem [resolvable:$true] %s243_s13 }
  0x17   : > { %p1415_p9 = pneg %p1879_p8  ;;  %s1772_s15 = smov [#allocation9]  }
  0x18   : > { %s256_s16 = sshll.u32 %s1772_s15, 4  ;;  %s1773_s17 = smov [#allocation11]   ;;  %s1894_s16 = int_to_ptr.vmem [resolvable:$true] %s256_s16 }
  0x19   : > { %p1890_p11 = pnand %p1415_p9, %p2255_p1  ;;  %s1896_s18 = sshll.u32 %s1773_s17, 4  ;;  %s270_s18 = int_to_ptr.vmem [resolvable:$true] %s1896_s18 }
  0x1a   : > { %s2270_s2 = sld [smem:[#allocation21_spill]] }
  0x1b   : > { %p1906_p13 = pneg %p1890_p11 }
  0x20   : > { %s1531_s21 = scalar_lea.hbm %s2270_s2, 256 }
  0x21   : > { %p1532_p12 = scmp.ne.s32.totalorder %s2270_s2, %s1531_s21  ;;  %p1538_p5 = scmp.lt.u32.totalorder %s1531_s21, %s2270_s2 }
  0x23   : > { %p1534_p0 = pnand %p1906_p13, %p1532_p12 }
  0x25   : > { %p1535_p3 = pneg %p1534_p0 }
  0x27   : > { %p1540_p7 = pnand %p1538_p5, %p1535_p3 }
  0x29   : > { %1543 = shalt.err (!%p1540_p7)
}
  0x2a   : > { %s1544_s17 = scalar_lea.vmem %s1883_s13, 256  ;;  %p1552_p2 = scmp.lt.s32.totalorder %s1883_s13, %s1883_s13 }
  0x2b   : > { %p1545_p9 = scmp.ne.s32.totalorder %s1883_s13, %s1544_s17  ;;  %p1553_p6 = scmp.lt.s32.totalorder %s1544_s17, %s1544_s17 }
  0x2d   : > { %p1547_p10 = pnand %p1545_p9, %p1906_p13  ;;  %p1554_p12 = por %p1553_p6, %p1552_p2 }
  0x2f   : > { %p1548_p1 = pneg %p1547_p10 }
  0x31   : > { %p1555_p0 = pnand %p1554_p12, %p1548_p1 }
  0x33   : > { %1558 = shalt.err (!%p1555_p0)
}
  0x34   : > { %s1774_s19 = smov 64   ;;  %s1775_s20 = smov 4  }
  0x35   : > { %1418 = dma.hbm_to_vmem [thread:$0]  (!%p1890_p11), %s2270_s2, 256, %s1883_s13, [#allocation7], %s1774_s19, %s1774_s19, %s1775_s20  }
  0x36   : > { %s1559_s15 = scalar_lea.hbm %s2250_s3, 256 }
  0x37   : > { %p1560_p1 = scmp.ne.s32.totalorder %s2250_s3, %s1559_s15  ;;  %p1566_p10 = scmp.lt.u32.totalorder %s1559_s15, %s2250_s3 }
  0x39   : > { %p1562_p2 = pnand %p1560_p1, %p1906_p13 }
  0x3b   : > { %p1563_p6 = pneg %p1562_p2 }
  0x3d   : > { %p1568_p3 = pnand %p1566_p10, %p1563_p6 }
  0x3f   : > { %1571 = shalt.err (!%p1568_p3)
}
  0x40   : > { %s1572_s13 = scalar_lea.vmem %s1894_s16, 256  ;;  %p1580_p12 = scmp.lt.s32.totalorder %s1894_s16, %s1894_s16 }
  0x41   : > { %p1573_p5 = scmp.ne.s32.totalorder %s1894_s16, %s1572_s13  ;;  %p1581_p0 = scmp.lt.s32.totalorder %s1572_s13, %s1572_s13 }
  0x43   : > { %p1575_p7 = pnand %p1573_p5, %p1906_p13  ;;  %p1582_p1 = por %p1581_p0, %p1580_p12 }
  0x45   : > { %p1576_p9 = pneg %p1575_p7 }
  0x47   : > { %p1583_p2 = pnand %p1582_p1, %p1576_p9 }
  0x49   : > { %1586 = shalt.err (!%p1583_p2)
}
  0x4a   : > { %1421 = dma.hbm_to_vmem [thread:$0]  (!%p1890_p11), %s2250_s3, 256, %s1894_s16, [#allocation10], %s1774_s19, %s1774_s19, %s1775_s20  }
  0x4b   : > { %s1587_s22 = scalar_lea.hbm %s2251_s4, 256 }
  0x4c   : > { %p1588_p6 = scmp.ne.s32.totalorder %s2251_s4, %s1587_s22  ;;  %p1594_p5 = scmp.lt.u32.totalorder %s1587_s22, %s2251_s4 }
  0x4e   : > { %p1590_p10 = pnand %p1588_p6, %p1906_p13 }
  0x50   : > { %p1591_p3 = pneg %p1590_p10 }
  0x52   : > { %p1596_p7 = pnand %p1594_p5, %p1591_p3 }
  0x54   : > { %1599 = shalt.err (!%p1596_p7)
}
  0x55   : > { %s1600_s13 = scalar_lea.vmem %s270_s18, 256  ;;  %p1608_p1 = scmp.lt.s32.totalorder %s270_s18, %s270_s18 }
  0x56   : > { %p1601_p9 = scmp.ne.s32.totalorder %s270_s18, %s1600_s13  ;;  %p1609_p2 = scmp.lt.s32.totalorder %s1600_s13, %s1600_s13 }
  0x58   : > { %p1603_p12 = pnand %p1601_p9, %p1906_p13  ;;  %p1610_p4 = por %p1609_p2, %p1608_p1 }
  0x5a   : > { %p1604_p0 = pneg %p1603_p12 }
  0x5c   : > { %p1611_p8 = pnand %p1610_p4, %p1604_p0 }
  0x5e   : > { %1614 = shalt.err (!%p1611_p8)
}
  0x5f   : > { %1424 = dma.hbm_to_vmem [thread:$0]  (!%p1890_p11), %s2251_s4, 256, %s270_s18, [#allocation10], %s1774_s19, %s1774_s19, %s1775_s20  }
  0x60   : > { %s48_s8 = sadd.s32 1, %s1757_s26  ;;  %s39_s14 = sadd.s32 1, %s1765_s28 }
  0x61   : > { %p55_p4 = scmp.ne.s32.totalorder %s1757_s26, %s1753_s25  ;;  %p41_p8 = scmp.ge.s32.totalorder %s39_s14, 2 }
  0x62   : > { %p56_p13 = scmp.eq.s32.totalorder %s1769_s29, 0  ;;  %p2272_p6 = scmp.eq.s32.totalorder %s1860_s30, 1 }
  0x63   : > { %p1439_p3 = scmp.lt.s32.totalorder %s1769_s29, 2  ;;  %s2294_s14 = smov (%p41_p8, %s39_s14), 0 }
  0x64   : > { %p1985_p10 = por %p2272_p6, %p55_p4  ;;  %p57_p5 = por %p56_p13, %p55_p4 }
  0x65   : > { %s1993_s10 = sand.u32 1, %s1757_s26   ;;  %s43_s18 = ssub.s32 %s1765_s28, %s2294_s14 }
  0x66   : > { %p46_p11 = scmp.eq.s32.totalorder %s43_s18, 0  ;;  %s1251_s19 = sshll.u32 %s1993_s10, 3 }
  0x67   : > { %s1252_s20 = sshll.u32 %s1765_s28, 7  ;;  %s2274_s0 = sld [smem:[#allocation20_spill]] }
  0x68   : > { %s2000_s21 = scalar_select %p46_p11, %s1757_s26, %s48_s8  }
  0x69   : > { %s293_s15 = scalar_lea.vmem [#allocation3], %s1251_s19  ;;  %p2011_p7 = pnand %p1439_p3, %p57_p5 }
  0x6a   : > { %s301_s17 = sshll.u32 %s293_s15, 4  ;;  %s1253_s16 = sshll.u32 %s1993_s10, 4  ;;  %s2007_s17 = int_to_ptr.vmem [resolvable:$true] %s301_s17 }
  0x6b   : > { %s290_s8 = scalar_lea.sflag [#allocation4], %s1993_s10  ;;  %p1617_p12 = pneg %p2011_p7 }
  0x6d   : > { %s2005_s12 = scalar_lea.hbm %s2274_s0, %s1252_s20  ;;  %s1620_s22 = scalar_lea.hbm %s2274_s0, 256 }
  0x6e   : > { %s1615_s18 = scalar_lea.hbm %s2005_s12, 128  ;;  %p1621_p2 = scmp.lt.u32.totalorder %s2005_s12, %s2274_s0 }
  0x6f   : > { %p1616_p9 = scmp.ne.s32.totalorder %s2005_s12, %s1615_s18  ;;  %p1622_p4 = scmp.lt.u32.totalorder %s1620_s22, %s1615_s18 }
  0x70   : > { %p1624_p13 = scmp.lt.u32.totalorder %s1615_s18, %s2005_s12 }
  0x71   : > { %p1618_p0 = pnand %p1617_p12, %p1616_p9  ;;  %p1623_p8 = por %p1622_p4, %p1621_p2 }
  0x73   : > { %p1619_p1 = pneg %p1618_p0  ;;  %p1625_p6 = por %p1624_p13, %p1623_p8 }
  0x75   : > { %p1626_p3 = pnand %p1625_p6, %p1619_p1 }
  0x77   : > { %1629 = shalt.err (!%p1626_p3)
}
  0x78   : > { %s1630_s7 = scalar_lea.vmem %s2007_s17, 128  ;;  %s1776_s19 = smov [#allocation3]  }
  0x79   : > { %p1631_p5 = scmp.ne.s32.totalorder %s2007_s17, %s1630_s7  ;;  %s1635_s20 = sshll.u32 %s1776_s19, 4  ;;  %s1636_s20 = int_to_ptr.vmem [resolvable:$false] %s1635_s20 }
  0x7a   : > { %s1637_s23 = scalar_lea.vmem %s1636_s20, 256  ;;  %p1638_p0 = scmp.lt.s32.totalorder %s2007_s17, %s1636_s20 }
  0x7b   : > { %p1633_p11 = pnand %p1631_p5, %p1617_p12  ;;  %p1639_p2 = scmp.lt.s32.totalorder %s1637_s23, %s1630_s7 }
  0x7d   : > { %p1634_p9 = pneg %p1633_p11  ;;  %p1640_p4 = por %p1639_p2, %p1638_p0 }
  0x7f   : > { %p1641_p8 = pnand %p1640_p4, %p1634_p9 }
  0x81   : > { %1644 = shalt.err (!%p1641_p8)
}
  0x82   : > { %1428 = dma.hbm_to_vmem [thread:$0]  (!%p2011_p7), %s2005_s12, 128, %s2007_s17, %s290_s8  }
  0x83   : > { %s312_s18 = scalar_lea.vmem [#allocation6], %s1253_s16  ;;  %s308_s15 = sand.u32 1, %s1769_s29  }
  0x84   : > { %s319_s22 = sshll.u32 %s312_s18, 4  ;;  %s2276_s19 = sshll.u32 %s1765_s28, 8  ;;  %s2046_s22 = int_to_ptr.vmem [resolvable:$true] %s319_s22 }
  0x85   : > { %s2053_s23 = scalar_lea.hbm %s2248_s1, %s2276_s19  ;;  %s2055_s0 = scalar_lea.sflag [#allocation7], %s308_s15 }
  0x86   : > { %s1645_s2 = scalar_lea.hbm %s2053_s23, 256  ;;  %s1650_s17 = scalar_lea.hbm %s2248_s1, 512 }
  0x87   : > { %p1646_p1 = scmp.ne.s32.totalorder %s2053_s23, %s1645_s2  ;;  %p1651_p3 = scmp.lt.u32.totalorder %s2053_s23, %s2248_s1 }
  0x88   : > { %p1652_p5 = scmp.lt.u32.totalorder %s1650_s17, %s1645_s2  ;;  %p1654_p9 = scmp.lt.u32.totalorder %s1645_s2, %s2053_s23 }
  0x89   : > { %p1648_p13 = pnand %p1646_p1, %p1617_p12 }
  0x8a   : > { %p1653_p11 = por %p1652_p5, %p1651_p3 }
  0x8b   : > { %p1649_p6 = pneg %p1648_p13 }
  0x8c   : > { %p1655_p0 = por %p1654_p9, %p1653_p11 }
  0x8e   : > { %p1656_p2 = pnand %p1655_p0, %p1649_p6 }
  0x90   : > { %1659 = shalt.err (!%p1656_p2)
}
  0x91   : > { %s1660_s18 = scalar_lea.vmem %s2046_s22, 256  ;;  %s1777_s15 = smov [#allocation6]  }
  0x92   : > { %p1661_p4 = scmp.ne.s32.totalorder %s2046_s22, %s1660_s18  ;;  %s1665_s19 = sshll.u32 %s1777_s15, 4  ;;  %s1666_s19 = int_to_ptr.vmem [resolvable:$false] %s1665_s19 }
  0x93   : > { %s1667_s7 = scalar_lea.vmem %s1666_s19, 512  ;;  %p1668_p13 = scmp.lt.s32.totalorder %s2046_s22, %s1666_s19 }
  0x94   : > { %p1663_p8 = pnand %p1661_p4, %p1617_p12  ;;  %p1669_p3 = scmp.lt.s32.totalorder %s1667_s7, %s1660_s18 }
  0x96   : > { %p1664_p1 = pneg %p1663_p8  ;;  %p1670_p5 = por %p1669_p3, %p1668_p13 }
  0x98   : > { %p1671_p11 = pnand %p1670_p5, %p1664_p1 }
  0x9a   : > { %1674 = shalt.err (!%p1671_p11)
}
  0x9b   : > { %s1778_s2 = smov 128   ;;  %s1779_s20 = smov 8  }
  0x9c   : > { %1431 = dma.hbm_to_vmem [thread:$0]  (!%p2011_p7), %s2053_s23, 256, %s2046_s22, %s2055_s0, %s1778_s2, %s1778_s2, %s1779_s20  }
  0x9d   : > { %p2277_p12 = scmp.ne.s32.totalorder %s2268_s11, 0 }
  0x9e   : > { %s2084_s10 = sand.u32 (!%p2277_p12), 1, %s1753_s25   ;;  %p2278_p6 = scmp.ne.s32.totalorder (!%p2277_p12), %s2265_s9, 0 }
  0x9f   : > { %331 = sbr.rel (%p2277_p12) target bundleno = 1634 (0x662), region = 48  ;;  %s1257_s12 = sshll.u32 (!%p2277_p12), %s2084_s10, 3 }
  0xa0   : > { %s334_s17 = scalar_lea.sflag (!%p2277_p12), [#allocation4], %s2084_s10  ;;  %s337_s16 = scalar_lea.vmem (!%p2277_p12), [#allocation3], %s1257_s12 }
  0xa6   : > { %1728 = dma.done.wait (%p2278_p6), %s334_s17, 128  }
  0xa7   : > { %1730 = vsyncadd (%p2278_p6), %s334_s17, 4294967168  ;;  %s342_s0 = sand.u32 1, %s1860_s30   ;;  %s1258_s11 = sshll.u32 %s2084_s10, 4 }
  0xa8   : > { %s343_s13 = scalar_lea.sflag [#allocation7], %s342_s0  ;;  %s346_s22 = scalar_lea.vmem [#allocation6], %s1258_s11 }
  0xa9   : > { %1732 = dma.done.wait (%p2278_p6), %s343_s13, 256  }
  0xaa   : > { %1734 = vsyncadd (%p2278_p6), %s343_s13, 4294967040  ;;  %p2279_p7 = scmp.eq.s32.totalorder %s1860_s30, 0 }
  0xac   : > { %1736 = dma.done.wait (%p2279_p7), [#allocation7], 256   ;;  %p2280_p9 = pmov %p2279_p7 }
  0xad   : > { %p2281_p0 = pmov %p2279_p7 }
  0xae   : > { %1738 = vsyncadd (%p2280_p9), [#allocation7], 4294967040 }
  0xaf   : > { %1740 = dma.done.wait (%p2281_p0), [#allocation10], 512   ;;  %p2282_p2 = pmov %p2281_p0 }
  0xb0   : > { %v1780_v0 = vmov 0.0   ;;  %vm1781_vm0 = vmmov 0   ;;  %v1507_v1 = vld [vmem:[#allocation9] sm:$0xff]   ;;  %v1508_v2 = vld [vmem:[#allocation9 + $0x8] sm:$0xff]   ;;  %v1509_v3 = vld [vmem:[#allocation8] sm:$0xff]   ;;  %vm428_vm1 = vcmask 261120  }
  0xb1   : > { %1742 = vsyncadd (%p2282_p2), [#allocation10], 4294966784  ;;  %1325 = vmatprep.subr.bf16.mxu1 %v1780_v0  ;;  %1317 = vmatprep.subr.bf16.mxu0 %v1780_v0  ;;  %v397_v4 = vld [vmem:[%s346_s22] sm:$0xff]  ;;  %v398_v5 = vld [vmem:[%s346_s22 + $0x8] sm:$0xff]  ;;  %vm584_vm2 = vcmask 64512   ;;  %s1782_s30 = smov 112  }
  0xb2   : > { %1329 = vmatprep.mubr.msk.bf16.mxu1 %vm1781_vm0, %v1780_v0  ;;  %1321 = vmatprep.mubr.msk.bf16.mxu0 %vm1781_vm0, %v1780_v0  ;;  %v1510_v6 = vld [vmem:[#allocation8 + $0x8] sm:$0xff]   ;;  %v395_v7 = vld [vmem:[%s337_s16] sm:$0xff]  ;;  %v399_v8 = vpack.c.bf16 %v398_v5, %v397_v4  ;;  %s1783_s9 = smov 120   ;;  %s1784_s23 = smov 104   ;;  %v1511_v21 = vld [vmem:[#allocation11] sm:$0xff]   ;;  %vm631_vm3 = vcmask 130048  }
  0xb3   : > { %1326 = vmatpush3.bf16.msra.mxu1 %v1507_v1  ;;  %1318 = vmatpush3.bf16.msra.mxu0 %v1509_v3  ;;  %v396_v9 = vpack.c.bf16 %v395_v7, %v395_v7  ;;  %v1512_v22 = vld [vmem:[#allocation11 + $0x8] sm:$0xff]   ;;  %s1785_s8 = smov 8   ;;  %s1786_s2 = smov 16   ;;  %vm803_vm4 = vcmask 130112   ;;  %vm917_vm5 = vcmask 195712   ;;  %vm1031_vm6 = vcmask 261312  }
  0xb4   : > { %1327 = vmatprep.subr.bf16.mxu1 %v1780_v0  ;;  %1319 = vmatprep.subr.bf16.mxu0 %v1780_v0  ;;  %s1787_s20 = smov 24   ;;  %s1285_s0 = sshll.u32 %s1761_s27, 7 }
  0xb5   : > { %s393_s11 = scalar_lea.vmem [#allocation12], %s1257_s12  ;;  %s1099_s27 = scalar_lea.sflag [#allocation5], %s2084_s10 }
  0xb6   : > { %s1113_s13 = sshll.u32 %s393_s11, 4  ;;  %s2199_s13 = int_to_ptr.vmem [resolvable:$true] %s1113_s13 }
  0xb7   : > { %1328 = vmatpush3.bf16.msra.mxu1 %v1508_v2  ;;  %1320 = vmatpush3.bf16.msra.mxu0 %v1510_v6  ;;  %s1675_s12 = scalar_lea.vmem %s2199_s13, 128 }
  0xb8   : > { %1341 = vmatprep.subr.bf16.mxu1 %v1780_v0  ;;  %1333 = vmatprep.subr.bf16.mxu0 %v1780_v0  ;;  %p1676_p4 = scmp.ne.s32.totalorder %s2199_s13, %s1675_s12 }
  0xba   : > { %1330 = vmatmul.mubr.msk.bf16.vlgmr.msra.gmra.mrb[0].mxu1 %vm428_vm1, %v399_v8  ;;  %1322 = vmatmul.mubr.msk.bf16.vlgmr.msra.gmra.mrb[0].mxu0 %vm428_vm1, %v396_v9  ;;  %p1677_p8 = pnand %p1676_p4, %p1985_p10 }
  0xbb   : > { %1343 = vmatprep.mubr.msk.bf16.mxu1 %vm1781_vm0, %v1780_v0  ;;  %1337 = vmatprep.mubr.msk.bf16.mxu0 %vm1781_vm0, %v1780_v0 }
  0xbc   : > { %1334 = vmatpush3.bf16.msra.mxu0 %v1511_v21  ;;  %p1678_p1 = pneg %p1677_p8 }
  0xbd   : > { %1335 = vmatprep.subr.bf16.mxu0 %v1780_v0 }
  0xc0   : > { %1336 = vmatpush3.bf16.msra.mxu0 %v1512_v22 }
  0xc1   : > { %1347 = vmatprep.subr.bf16.mxu0 %v1780_v0 }
  0xc3   : > { %1338 = vmatmul.mubr.msk.bf16.vlgmr.msra.gmra.mrb[4].mxu0 %vm428_vm1, %v399_v8 }
  0xc4   : > { %1349 = vmatprep.mubr.msk.bf16.mxu0 %vm1781_vm0, %v1780_v0 }
 0x18d   : > { %v521_v10 = vpop.f32.mrb[0].mxu1  ;;  %v466_v13 = vpop.f32.mrb[0].mxu0 }
 0x18e   : > { %v1331_v11 = vpop.f32.mrb[1].mxu1  ;;  %v1323_v16 = vpop.f32.mrb[1].mxu0  ;;  %v581_v18 = vpack.c.bf16 %v466_v13, %v466_v13 }
 0x18f   : > { %v524_v12 = vpop.f32.mrb[2].mxu1  ;;  %v469_v17 = vpop.f32.mrb[2].mxu0 }
 0x190   : > { %v582_v14 = vpack.c.bf16 %v524_v12, %v521_v10  ;;  %v1332_v15 = vpop.f32.mrb[3].mxu1  ;;  %v1324_v20 = vpop.f32.mrb[3].mxu0 }
 0x192   : > { %807 = vrot.lane.b32.xlu1 %v582_v14, %s1782_s30  ;;  %692 = vrot.lane.b32.xlu0 %v582_v14, %s1783_s9  ;;  %v589_v19 = vsel %vm584_vm2, %v582_v14, 0 }
 0x193   : > { %1342 = vmatpush3.bf16.xpose.msra.mxu1 %v589_v19 }
 0x194   : > { %1353 = vmatprep.subr.bf16.mxu1 %v1780_v0 }
 0x196   : > { %805 = vrot.lane.b32.xlu1 %v581_v18, %s1782_s30  ;;  %689 = vrot.lane.b32.xlu0 %v581_v18, %s1783_s9  ;;  %v574_v37 = vpop.f32.mrb[4].mxu0 }
 0x197   : > { %v1339_v38 = vpop.f32.mrb[5].mxu0 }
 0x198   : > { %v577_v39 = vpop.f32.mrb[6].mxu0 }
 0x199   : > { %v583_v40 = vpack.c.bf16 %v577_v39, %v574_v37  ;;  %v1340_v41 = vpop.f32.mrb[7].mxu0 }
 0x19a   : > { %919 = vrot.lane.b32.xlu1 %v581_v18, %s1784_s23  ;;  %921 = vrot.lane.b32.xlu0 %v582_v14, %s1784_s23  ;;  %v1513_v41 = vld [vmem:[%s2252_s5] sm:$0xff]  }
 0x19b   : > { %1344 = vmatmul.mubr.msk.bf16.vlgmr.msra.gmra.mrb[4].mxu1 %vm584_vm2, %v581_v18  ;;  %1348 = vmatpush3.bf16.msra.mxu0 %v583_v40 }
 0x19c   : > { %1355 = vmatprep.mubr.msk.bf16.mxu1 %vm1781_vm0, %v1780_v0  ;;  %1359 = vmatprep.subr.bf16.mxu0 %v1780_v0 }
 0x204   : > { %v693_v23 = vpop.permute.xlu0 %692  ;;  %v808_v25 = vpop.permute.xlu1 %807 }
 0x205   : > { %v698_v24 = vsel %vm584_vm2, %v693_v23, 0  ;;  %v813_v27 = vsel %vm584_vm2, %v808_v25, 0 }
 0x206   : > { %1354 = vmatpush3.bf16.xpose.msra.mxu1 %v698_v24 }
 0x207   : > { %1365 = vmatprep.subr.bf16.mxu1 %v1780_v0 }
 0x208   : > { %v690_v26 = vpop.permute.xlu0 %689  ;;  %v806_v29 = vpop.permute.xlu1 %805 }
 0x20c   : > { %v922_v28 = vpop.permute.xlu0 %921  ;;  %v920_v31 = vpop.permute.xlu1 %919 }
 0x20d   : > { %1356 = vmatmul.mubr.msk.bf16.vlgmr.msra.gmra.mrb[8].mxu1 %vm584_vm2, %v690_v26  ;;  %v927_v30 = vsel %vm584_vm2, %v922_v28, 0 }
 0x20e   : > { %1366 = vmatpush3.bf16.xpose.msra.mxu1 %v813_v27  ;;  %1367 = vmatprep.mubr.msk.bf16.mxu1 %vm1781_vm0, %v1780_v0 }
 0x20f   : > { %1377 = vmatprep.subr.bf16.mxu1 %v1780_v0 }
 0x215   : > { %1368 = vmatmul.mubr.msk.bf16.vlgmr.msra.gmra.mrb[12].mxu1 %vm584_vm2, %v806_v29 }
 0x216   : > { %1378 = vmatpush3.bf16.xpose.msra.mxu1 %v927_v30  ;;  %1379 = vmatprep.mubr.msk.bf16.mxu1 %vm1781_vm0, %v1780_v0 }
 0x217   : > { %1389 = vmatprep.subr.bf16.mxu1 %v1780_v0 }
 0x21d   : > { %1380 = vmatmul.mubr.msk.bf16.vlgmr.msra.gmra.mrb[16].mxu1 %vm584_vm2, %v920_v31 }
 0x21e   : > { %1393 = vmatprep.mubr.msk.bf16.mxu1 %vm1781_vm0, %v1780_v0  ;;  %1390 = vmatpush3.bf16.msra.mxu1 %v1513_v41 }
 0x21f   : > { %1391 = vmatprep.subr.bf16.mxu1 %v1780_v0 }
 0x26e   : > { %v625_v32 = vpop.f32.mrb[4].mxu1 }
 0x26f   : > { %v1345_v33 = vpop.f32.mrb[5].mxu1  ;;  %v632_v34 = vsel %vm631_vm3, %v625_v32, -inf }
 0x270   : > { %633 = vmax.xlane.f32.xlu0 %v632_v34  ;;  %v628_v35 = vpop.f32.mrb[6].mxu1 }
 0x271   : > { %v1346_v36 = vpop.f32.mrb[7].mxu1 }
 0x2e0   : > { %v734_v42 = vpop.f32.mrb[8].mxu1 }
 0x2e1   : > { %v1357_v43 = vpop.f32.mrb[9].mxu1  ;;  %v740_v44 = vsel %vm631_vm3, %v734_v42, -inf }
 0x2e2   : > { %741 = vmax.xlane.f32.xlu1 %v740_v44  ;;  %v737_v45 = vpop.f32.mrb[10].mxu1 }
 0x2e3   : > { %v1358_v46 = vpop.f32.mrb[11].mxu1 }
 0x2e8   : > { %v849_v47 = vpop.f32.mrb[12].mxu1 }
 0x2e9   : > { %v1369_v48 = vpop.f32.mrb[13].mxu1  ;;  %v855_v49 = vsel %vm631_vm3, %v849_v47, -inf }
 0x2ea   : > { %856 = vmax.xlane.f32.xlu0 %v855_v49  ;;  %v852_v50 = vpop.f32.mrb[14].mxu1 }
 0x2eb   : > { %v1370_v51 = vpop.f32.mrb[15].mxu1 }
 0x2f0   : > { %v963_v52 = vpop.f32.mrb[16].mxu1 }
 0x2f1   : > { %v1381_v53 = vpop.f32.mrb[17].mxu1  ;;  %v969_v54 = vsel %vm631_vm3, %v963_v52, -inf }
 0x2f2   : > { %970 = vmax.xlane.f32.xlu0 %v969_v54  ;;  %v966_v55 = vpop.f32.mrb[18].mxu1 }
 0x2f3   : > { %v1382_v56 = vpop.f32.mrb[19].mxu1  ;;  %v1280_v55 = vld [vmem:[%s2253_s6] ss:$0 sm:$0xff] }
 0x2fd   : > { %v634_v57 = vpop.xlane.xlu0 %633 }
 0x2fe   : > { %v635_v58 = vsub.f32 %v625_v32, %v634_v57 }
 0x300   : > { %v636_v59 = vmul.f32 1.442695, %v635_v58 }
 0x302   : > { %1515 = vpow2.f32 %v636_v59 }
 0x30c   : > { %v1516_v60 = vpop.eup %1515 }
 0x30d   : > { %v638_v61 = vsel %vm631_vm3, %v1516_v60, 0.0 }
 0x30e   : > { %639 = vadd.xlane.f32.xlu1 %v638_v61 }
 0x31f   : > { %753 = vrot.lane.b32.xlu1 %v583_v40, %s1783_s9  ;;  %s2283_s9 = sld [smem:[#allocation22_spill]] }
 0x36f   : > { %v742_v62 = vpop.xlane.xlu1 %741 }
 0x370   : > { %v743_v63 = vsub.f32 %v734_v42, %v742_v62  ;;  %v1514_v42 = vld [vmem:[%s2252_s5 + $0x8] sm:$0xff]  }
 0x371   : > { %1392 = vmatpush3.bf16.msra.mxu1 %v1514_v42 }
 0x372   : > { %v744_v1 = vmul.f32 1.442695, %v743_v63 }
 0x374   : > { %1517 = vpow2.f32 %v744_v1 }
 0x377   : > { %v857_v2 = vpop.xlane.xlu0 %856 }
 0x378   : > { %v858_v3 = vsub.f32 %v849_v47, %v857_v2 }
 0x37a   : > { %v859_v4 = vmul.f32 1.442695, %v858_v3 }
 0x37c   : > { %1519 = vpow2.f32 %v859_v4 }
 0x37e   : > { %v1518_v5 = vpop.eup %1517 }
 0x37f   : > { %v971_v6 = vpop.xlane.xlu0 %970  ;;  %v746_v7 = vsel %vm631_vm3, %v1518_v5, 0.0 }
 0x380   : > { %v972_v8 = vsub.f32 %v963_v52, %v971_v6  ;;  %747 = vadd.xlane.f32.xlu0 %v746_v7 }
 0x382   : > { %v973_v9 = vmul.f32 1.442695, %v972_v8 }
 0x384   : > { %1521 = vpow2.f32 %v973_v9 }
 0x386   : > { %v1520_v10 = vpop.eup %1519 }
 0x387   : > { %v861_v11 = vsel %vm631_vm3, %v1520_v10, 0.0 }
 0x388   : > { %862 = vadd.xlane.f32.xlu1 %v861_v11 }
 0x38e   : > { %v1522_v12 = vpop.eup %1521 }
 0x38f   : > { %v975_v13 = vsel %vm631_vm3, %v1522_v12, 0.0 }
 0x390   : > { %976 = vadd.xlane.f32.xlu0 %v975_v13 }
 0x399   : > { %981 = vrot.lane.b32.xlu1 %v583_v40, %s1784_s23  ;;  %s2197_s23 = scalar_lea.hbm %s2283_s9, %s1285_s0 }
 0x39b   : > { %v640_v14 = vpop.xlane.xlu1 %639 }
 0x39c   : > { %1523 = vrcp.f32 %v640_v14 }
 0x39f   : > { %v754_v18 = vpop.permute.xlu1 %753 }
 0x3a6   : > { %v1524_v15 = vpop.eup %1523  ;;  %867 = vrot.lane.b32.xlu0 %v583_v40, %s1782_s30 }
 0x3a7   : > { %v642_v16 = vmul.f32 %v1524_v15, %v1516_v60 }
 0x3a9   : > { %v643_v17 = vpack.c.bf16 %v642_v16, %v642_v16 }
 0x3ab   : > { %1350 = vmatmul.mubr.msk.bf16.vlgmr.msra.gmra.mrb[8].mxu0 %vm631_vm3, %v643_v17 }
 0x3ac   : > { %1360 = vmatpush3.bf16.msra.mxu0 %v754_v18  ;;  %1361 = vmatprep.mubr.msk.bf16.mxu0 %vm1781_vm0, %v1780_v0 }
 0x3ad   : > { %1371 = vmatprep.subr.bf16.mxu0 %v1780_v0 }
 0x40d   : > { %v748_v19 = vpop.xlane.xlu0 %747 }
 0x40e   : > { %1525 = vrcp.f32 %v748_v19 }
 0x415   : > { %v863_v20 = vpop.xlane.xlu1 %862 }
 0x416   : > { %1527 = vrcp.f32 %v863_v20 }
 0x418   : > { %v1526_v21 = vpop.eup %1525 }
 0x419   : > { %v750_v22 = vmul.f32 %v1526_v21, %v1518_v5  ;;  %v982_v29 = vpop.permute.xlu1 %981 }
 0x41b   : > { %v751_v23 = vpack.c.bf16 %v750_v22, %v750_v22 }
 0x41d   : > { %v977_v24 = vpop.xlane.xlu0 %976  ;;  %1362 = vmatmul.mubr.msk.bf16.vlgmr.msra.gmra.mrb[12].mxu0 %vm631_vm3, %v751_v23 }
 0x41e   : > { %1529 = vrcp.f32 %v977_v24  ;;  %1373 = vmatprep.mubr.msk.bf16.mxu0 %vm1781_vm0, %v1780_v0 }
 0x420   : > { %v1528_v25 = vpop.eup %1527 }
 0x421   : > { %v865_v26 = vmul.f32 %v1528_v25, %v1520_v10  ;;  %v868_v27 = vpop.permute.xlu0 %867 }
 0x422   : > { %1372 = vmatpush3.bf16.msra.mxu0 %v868_v27 }
 0x423   : > { %v866_v28 = vpack.c.bf16 %v865_v26, %v865_v26  ;;  %1383 = vmatprep.subr.bf16.mxu0 %v1780_v0 }
 0x425   : > { %1374 = vmatmul.mubr.msk.bf16.vlgmr.msra.gmra.mrb[16].mxu0 %vm631_vm3, %v866_v28 }
 0x426   : > { %1384 = vmatpush3.bf16.msra.mxu0 %v982_v29  ;;  %1385 = vmatprep.mubr.msk.bf16.mxu0 %vm1781_vm0, %v1780_v0 }
 0x428   : > { %v1530_v30 = vpop.eup %1529 }
 0x429   : > { %v979_v31 = vmul.f32 %v1530_v30, %v1522_v12 }
 0x42b   : > { %v980_v32 = vpack.c.bf16 %v979_v31, %v979_v31 }
 0x42d   : > { %1386 = vmatmul.mubr.msk.bf16.vlgmr.msra.gmra.mrb[20].mxu0 %vm631_vm3, %v980_v32 }
 0x47e   : > { %v681_v33 = vpop.f32.mrb[8].mxu0 }
 0x47f   : > { %687 = vst.msk [vmem:[#allocation2] sm:$0xff] %vm584_vm2, %v681_v33  ;;  %v1351_v34 = vpop.f32.mrb[9].mxu0 }
 0x480   : > { %v684_v35 = vpop.f32.mrb[10].mxu0 }
 0x481   : > { %v1352_v36 = vpop.f32.mrb[11].mxu0 }
 0x4f0   : > { %v793_v37 = vpop.f32.mrb[12].mxu0 }
 0x4f1   : > { %800 = vrot.lane.b32.xlu1 %v793_v37, %s1785_s8  ;;  %v1363_v38 = vpop.f32.mrb[13].mxu0  ;;  %s1788_s8 = smov [#allocation12]  }
 0x4f2   : > { %v796_v39 = vpop.f32.mrb[14].mxu0  ;;  %s1679_s18 = sshll.u32 %s1788_s8, 4  ;;  %s1680_s18 = int_to_ptr.vmem [resolvable:$false] %s1679_s18 }
 0x4f3   : > { %v1364_v40 = vpop.f32.mrb[15].mxu0  ;;  %s1681_s15 = scalar_lea.vmem %s1680_s18, 256  ;;  %p1682_p13 = scmp.lt.s32.totalorder %s2199_s13, %s1680_s18 }
 0x4f4   : > { %p1683_p3 = scmp.lt.s32.totalorder %s1681_s15, %s1675_s12 }
 0x4f6   : > { %p1684_p5 = por %p1683_p3, %p1682_p13 }
 0x4f8   : > { %v907_v43 = vpop.f32.mrb[16].mxu0  ;;  %p1685_p11 = pnand %p1684_p5, %p1678_p1 }
 0x4f9   : > { %914 = vrot.lane.b32.xlu0 %v907_v43, %s1786_s2  ;;  %v1375_v44 = vpop.f32.mrb[17].mxu0 }
 0x4fa   : > { %v910_v45 = vpop.f32.mrb[18].mxu0 }
 0x4fb   : > { %v1376_v46 = vpop.f32.mrb[19].mxu0 }
 0x500   : > { %v1021_v47 = vpop.f32.mrb[20].mxu0 }
 0x501   : > { %1028 = vrot.lane.b32.xlu1 %v1021_v47, %s1787_s20  ;;  %v1387_v48 = vpop.f32.mrb[21].mxu0 }
 0x502   : > { %v1024_v49 = vpop.f32.mrb[22].mxu0 }
 0x503   : > { %v1388_v50 = vpop.f32.mrb[23].mxu0 }
 0x563   : > { %v801_v51 = vpop.permute.xlu1 %800 }
 0x564   : > { %804 = vst.msk [vmem:[#allocation2] sm:$0xff] %vm803_vm4, %v801_v51 }
 0x56b   : > { %v915_v0 = vpop.permute.xlu0 %914 }
 0x56c   : > { %918 = vst.msk [vmem:[#allocation2] sm:$0xff] %vm917_vm5, %v915_v0 }
 0x573   : > { %v1029_v52 = vpop.permute.xlu1 %1028 }
 0x574   : > { %1032 = vst.msk [vmem:[#allocation2] sm:$0xff] %vm1031_vm6, %v1029_v52 }
 0x57b   : > { %v1033_v53 = vld [vmem:[#allocation2] sm:$0xff] }
 0x57c   : > { %v1034_v54 = vpack.c.bf16 %v1033_v53, %v1033_v53 }
 0x57e   : > { %1394 = vmatmul.mubr.msk.bf16.vlgmr.msra.gmra.mrb[20].mxu1 %vm428_vm1, %v1034_v54 }
 0x651   : > { %v1091_v56 = vpop.f32.mrb[20].mxu1 }
 0x652   : > { %v1092_v57 = vadd.f32 %v1280_v55, %v1091_v56  ;;  %v1395_v58 = vpop.f32.mrb[21].mxu1 }
 0x653   : > { %v1094_v59 = vpop.f32.mrb[22].mxu1 }
 0x654   : > { %v1396_v60 = vpop.f32.mrb[23].mxu1  ;;  %1097 = vst.msk [vmem:[%s393_s11] sm:$0xff] %vm428_vm1, %v1092_v57 }
 0x655   : > { %1688 = shalt.err (!%p1685_p11)
}
 0x656   : > { %s1689_s10 = scalar_lea.hbm %s2197_s23, 128  ;;  %s1693_s2 = scalar_lea.hbm %s2283_s9, 256 }
 0x657   : > { %p1690_p12 = scmp.ne.s32.totalorder %s2197_s23, %s1689_s10  ;;  %p1694_p9 = scmp.lt.u32.totalorder %s2197_s23, %s2283_s9 }
 0x658   : > { %p1695_p0 = scmp.lt.u32.totalorder %s1693_s2, %s1689_s10  ;;  %p1697_p4 = scmp.lt.u32.totalorder %s1689_s10, %s2197_s23 }
 0x659   : > { %p1691_p6 = pnand %p1690_p12, %p1985_p10 }
 0x65a   : > { %p1696_p2 = por %p1695_p0, %p1694_p9 }
 0x65b   : > { %p1692_p7 = pneg %p1691_p6 }
 0x65c   : > { %p1698_p8 = por %p1697_p4, %p1696_p2 }
 0x65e   : > { %p1699_p1 = pnand %p1698_p8, %p1692_p7 }
 0x660   : > { %1702 = shalt.err (!%p1699_p1)
}
 0x661   : > { %1413 = dma.vmem_to_hbm [thread:$0]  (%p1985_p10), %s2199_s13, 128, %s2197_s23, %s1099_s27  }
 0x662 PF: > { %s2284_s16 = sld [smem:[#allocation18_spill]]  ;;  %s2285_s0 = sld [smem:[#allocation19_spill]] }
 0x663   : > { %p2287_p3 = scmp.ge.s32.totalorder %s1769_s29, 2 }
 0x668   : > { %s1125_s11 = sand.u32 1, %s2284_s16   ;;  %p2286_p13 = scmp.ne.s32.totalorder %s2285_s0, 0 }
 0x669   : > { %s1126_s22 = scalar_lea.sflag [#allocation5], %s1125_s11 }
 0x66a   : > { %p1433_p5 = pnand %p2287_p3, %p2286_p13 }
 0x66c   : > { %1744 = dma.done.wait (!%p1433_p5), %s1126_s22, 128  }
 0x66d   : > { %1746 = vsyncadd (!%p1433_p5), %s1126_s22, 4294967168  ;;  %s27_s29 = sadd.s32 1, %s1769_s29   ;;  %s2288_s24 = smov %s1753_s25 }
 0x66e   : > { %p24_p11 = scmp.ge.s32.totalorder %s27_s29, 4   ;;  %s2289_s25 = smov %s1757_s26 }
 0x66f   : > { %s2290_s26 = smov %s2000_s21  ;;  %s2291_s27 = smov %s1765_s28 }
 0x670   : > { %s2292_s28 = smov %s2294_s14  ;;  %26 = sbr.rel (!%p24_p11) target bundleno = 13 (0xd), region = 118 }
 0x677   :  { %1131 = vsyncpa [#allocation4], 1 }
 0x678   :  { %1133 = vsyncpa [#allocation4 + $0x1], 1 }
 0x679   :  { %1134 = vsyncpa [#allocation7], 1 }
 0x67a   :  { %1136 = vsyncpa [#allocation7 + $0x1], 1 }
 0x67b   :  { %1137 = vsyncpa [#allocation10], 1 }
 0x67c   :  { %1138 = vsyncpa [#allocation5], 1 }
 0x67d   :  { %1140 = vsyncpa [#allocation5 + $0x1], 1 }

</bundles_post_ra>
